<compile_context>
chip_gen: v6e
topology: v6e:2x2x1
jax: 0.10.0
libtpu: 0.0.40
codegen_flags: <defaults>
</compile_context>

<pallas_src>
import functools

import jax
import jax.numpy as jnp
from jax import lax
from jax.experimental import pallas as pl
from jax.experimental.pallas import tpu as pltpu


def _attention_ca_kernel(x_ref, wqkv_t_ref, wo_t_ref, o_ref,
                         q_scr, k_scr, v_scr, *, tq, n, c):
    # x_ref:      (1, C, N)  f32, channels on sublane, tokens on lane (lane-dense)
    # wqkv_t_ref: (3C, C)    bf16 fused [scale*Wq^T; Wk^T; Wv^T]
    # wo_t_ref:   (C, C)     bf16 Wo^T
    # o_ref:      (1, C, TQ) lane-dense output tile
    # q_scr: (C, N) f32   k_scr/v_scr: (C, N) bf16  -- per-batch projections
    qi = pl.program_id(1)

    # Project Q/K/V once per batch element (query-tile index 0), reuse after.
    # NOTE: relies on the query grid axis being "arbitrary" (fully iterated per
    # batch on one core); do not flip it to "parallel" without hoisting this.
    @pl.when(qi == 0)
    def _():
        x_bf = x_ref[0].astype(jnp.bfloat16)                       # (C, N)
        qkv = jnp.dot(wqkv_t_ref[...], x_bf,
                      preferred_element_type=jnp.float32)          # (3C, N) f32
        q_scr[...] = qkv[0:c]                                      # scale already in Wq
        k_scr[...] = qkv[c:2 * c].astype(jnp.bfloat16)
        v_scr[...] = qkv[2 * c:3 * c].astype(jnp.bfloat16)

    start = pl.multiple_of(qi * tq, tq)

    # Small per-tile (C, TQ) -> (TQ, C) transpose; cheap, overlaps with MXU work
    # (unlike the old per-batch (C, N) -> (N, C) transpose).
    q_t = jnp.transpose(q_scr[:, pl.ds(start, tq)]).astype(jnp.bfloat16)  # (TQ, C)

    # Scores: (TQ, C) @ (C, N) -> (TQ, N), bf16 feeds, f32 accumulation.
    s = jnp.dot(q_t, k_scr[...], preferred_element_type=jnp.float32)
    s = s - jnp.max(s, axis=-1, keepdims=True)      # f32 lane-axis max
    p = jnp.exp(s)                                  # f32, values in (0, 1]
    p_bf = p.astype(jnp.bfloat16)                   # bf16 MXU feed

    # Unnormalized PV (A.B^T form) and per-query partition sums.  The sums come
    # out lane-dense (1, TQ) from a ones-row matmul using the SAME bf16 p as the
    # numerator with f32 MXU accumulation -> normalization stays consistent and
    # needs no (TQ,1)->(1,TQ) relayout.
    out_t = lax.dot_general(v_scr[...], p_bf, (((1,), (1,)), ((), ())),
                            preferred_element_type=jnp.float32)    # (C, TQ)
    ones_row = jnp.ones((1, n), dtype=jnp.bfloat16)
    l_row = lax.dot_general(ones_row, p_bf, (((1,), (1,)), ((), ())),
                            preferred_element_type=jnp.float32)    # (1, TQ)

    y_t = jnp.dot(wo_t_ref[...], out_t.astype(jnp.bfloat16),
                  preferred_element_type=jnp.float32)              # (C, TQ)
    # Deferred softmax normalization: C*TQ multiplies instead of TQ*N.
    y_t = y_t * pl.reciprocal(l_row, approx=True)

    x_tile = x_ref[0, :, pl.ds(start, tq)]                         # (C, TQ) f32
    o_ref[0] = (x_tile + y_t).astype(o_ref.dtype)


def _pick_tq(n):
    """Lane-dense query-tile size: <=256 (128 for big N), >=2 tiles if possible."""
    cands = (128,) if n >= 4096 else (256, 128)
    for cand in cands:
        if n % cand == 0 and n // cand >= 2:
            return cand
    if n % 128 == 0:
        return 128
    return n


def attention_ca_forward(x_nchw, wq, wk, wv, wo):
    """x_nchw: [B, C, H, W] float32 -> [B, C, H, W] float32."""
    B, C, H, W = x_nchw.shape
    N = H * W
    scale = 1.0 / float(C) ** 0.5

    # NCHW flattened: channels on sublane, tokens on lane. No transpose needed.
    x_cn = x_nchw.reshape(B, C, N)

    # Layout/dtype plumbing on tiny constants only: fused, pre-transposed bf16
    # weights with 1/sqrt(C) folded into the Wq rows.
    w_qkv_t = jnp.concatenate([(wq * scale).T, wk.T, wv.T],
                              axis=0).astype(jnp.bfloat16)          # (3C, C)
    wo_t = wo.T.astype(jnp.bfloat16)                                # (C, C)

    tq = _pick_tq(N)
    n_q = N // tq

    kernel = functools.partial(_attention_ca_kernel, tq=tq, n=N, c=C)

    cost = pl.CostEstimate(
        flops=int(2 * B * N * (4 * C * C + 2 * C * N + N)),
        transcendentals=int(B * N * N),
        bytes_accessed=int(2 * B * C * N * 4 + 4 * C * C * 2),
    )

    # Explicit VMEM budget (v5e's default scoped limit is only 16 MiB).
    vmem_est = (
        2 * C * N * 4            # x blocks (double-buffered, f32)
        + 2 * C * tq * 4         # out tiles (double-buffered, f32)
        + 2 * 4 * C * C * 2      # weights (bf16, double-buffered)
        + C * N * 4              # q scratch (f32)
        + 2 * C * N * 2          # k/v scratch (bf16)
        + 4 * tq * N * 4         # s/p temporaries
        + (2 << 20)              # compiler-internal slack
    )
    vmem_limit = int(min(max(2 * vmem_est, 16 << 20), 64 << 20))

    out_cn = pl.pallas_call(
        kernel,
        out_shape=jax.ShapeDtypeStruct((B, C, N), x_cn.dtype),
        grid_spec=pltpu.PrefetchScalarGridSpec(
            num_scalar_prefetch=0,
            grid=(B, n_q),
            in_specs=[
                pl.BlockSpec((1, C, N), lambda b, qi: (b, 0, 0)),   # x, resident per batch
                pl.BlockSpec((3 * C, C), lambda b, qi: (0, 0)),     # fused [scale*Wq; Wk; Wv]^T
                pl.BlockSpec((C, C), lambda b, qi: (0, 0)),         # Wo^T
            ],
            out_specs=pl.BlockSpec((1, C, tq), lambda b, qi: (b, 0, qi)),
            scratch_shapes=[
                pltpu.VMEM((C, N), jnp.float32),    # q (channel-major)
                pltpu.VMEM((C, N), jnp.bfloat16),   # k
                pltpu.VMEM((C, N), jnp.bfloat16),   # v
            ],
        ),
        compiler_params=pltpu.CompilerParams(
            # batch is independent (megacore shard); query tiles reuse the
            # per-batch K/V scratch so that axis must stay "arbitrary".
            dimension_semantics=("parallel", "arbitrary"),
            vmem_limit_bytes=vmem_limit,
        ),
        cost_estimate=cost,
    )(x_cn, w_qkv_t, wo_t)

    return out_cn.reshape(B, C, H, W)


def attention_ca_reference(x_nchw, wq, wk, wv, wo):
    """Pure-JAX f32 reference of the same forward for verification."""
    B, C, H, W = x_nchw.shape
    N = H * W
    scale = 1.0 / float(C) ** 0.5
    x = jnp.transpose(x_nchw.reshape(B, C, N), (0, 2, 1))           # (B, N, C)
    q = jnp.einsum("bnc,cd->bnd", x, wq)
    k = jnp.einsum("bnc,cd->bnd", x, wk)
    v = jnp.einsum("bnc,cd->bnd", x, wv)
    s = jnp.einsum("bnd,bmd->bnm", q, k) * scale
    p = jax.nn.softmax(s, axis=-1)
    out = jnp.einsum("bnm,bmc->bnc", p, v)
    out = jnp.einsum("bnc,cd->bnd", out, wo)
    y = x + out
    return jnp.transpose(y, (0, 2, 1)).reshape(B, C, H, W)


if __name__ == "__main__":
    B, C, H, W = 2, 4, 16, 16

    key = jax.random.PRNGKey(0)
    kx, kq, kk, kv, ko = jax.random.split(key, 5)

    x = jax.random.normal(kx, (B, C, H, W), dtype=jnp.float32)
    # Deterministic "1x1 conv" weights, shape (C_in, C_out)
    wq = jax.random.normal(kq, (C, C), dtype=jnp.float32) * 0.2
    wk = jax.random.normal(kk, (C, C), dtype=jnp.float32) * 0.2
    wv = jax.random.normal(kv, (C, C), dtype=jnp.float32) * 0.2
    wo = jax.random.normal(ko, (C, C), dtype=jnp.float32) * 0.2

    y = attention_ca_forward(x, wq, wk, wv, wo)
    y = jax.block_until_ready(y)

    y_ref = attention_ca_reference(x, wq, wk, wv, wo)
    assert y.shape == (B, C, H, W)
    # bf16 MXU feeds + approximate softmax reciprocal => bf16-level tolerance
    # against the f32 reference (observed error is ~1e-3 at these shapes).
    assert jnp.allclose(y, y_ref, atol=2e-2, rtol=2e-2), "mismatch vs reference"

    print("KERNEL_OK")
</pallas_src>

<mosaic_0001>
module attributes {stable_mosaic.version = 11 : i64} {
  func.func @_attention_ca_kernel(%arg0: i32, %arg1: i32, %arg2: memref<1x4x256xf32, #tpu.memory_space<vmem>>, %arg3: memref<12x4xbf16, #tpu.memory_space<vmem>>, %arg4: memref<4x4xbf16, #tpu.memory_space<vmem>>, %arg5: memref<1x4x128xf32, #tpu.memory_space<vmem>>, %arg6: memref<4x256xf32, #tpu.memory_space<vmem>>, %arg7: memref<4x256xbf16, #tpu.memory_space<vmem>>, %arg8: memref<4x256xbf16, #tpu.memory_space<vmem>>) attributes {dimension_semantics = [#tpu.dimension_semantics<parallel>, #tpu.dimension_semantics<arbitrary>], iteration_bounds = array<i64: 2, 2>, scalar_prefetch = 0 : i64, scratch_operands = 3 : i64, tpu.core_type = #tpu.core_type<tc>, window_params = [{transform_indices = @transform_0, window_bounds = array<i64: 1, 4, 256>}, {pipeline_mode = #tpu.pipeline_mode<synchronous>, transform_indices = @transform_1, window_bounds = array<i64: 12, 4>}, {pipeline_mode = #tpu.pipeline_mode<synchronous>, transform_indices = @transform_2, window_bounds = array<i64: 4, 4>}, {transform_indices = @transform_3, window_bounds = array<i64: 1, 4, 128>}]} {
    %c0_i32 = arith.constant 0 : i32
    %0 = arith.cmpi eq, %arg1, %c0_i32 : i32
    %1 = arith.extui %0 : i1 to i32
    %c0_i32_0 = arith.constant 0 : i32
    %2 = arith.cmpi ne, %1, %c0_i32_0 : i32
    scf.if %2 {
      %c0_17 = arith.constant 0 : index
      %c0_18 = arith.constant 0 : index
      %c0_19 = arith.constant 0 : index
      %34 = vector.load %arg2[%c0_17, %c0_18, %c0_19] : memref<1x4x256xf32, #tpu.memory_space<vmem>>, vector<1x4x256xf32>
      %35 = vector.shape_cast %34 : vector<1x4x256xf32> to vector<4x256xf32>
      %36 = arith.truncf %35 : vector<4x256xf32> to vector<4x256xbf16>
      %c0_20 = arith.constant 0 : index
      %c0_21 = arith.constant 0 : index
      %37 = vector.load %arg3[%c0_20, %c0_21] : memref<12x4xbf16, #tpu.memory_space<vmem>>, vector<12x4xbf16>
      %cst_22 = arith.constant dense<0.000000e+00> : vector<12x256xf32>
      %38 = tpu.matmul %37, %36, %cst_22 {dimension_numbers = #tpu.dot_dimension_numbers<[1], [0], [0], [1], [0, 0, 1, 1], [], []>} : vector<12x4xbf16>, vector<4x256xbf16>, vector<12x256xf32> -> vector<12x256xf32>
      %39 = vector.extract_strided_slice %38 {offsets = [0, 0], sizes = [4, 256], strides = [1, 1]} : vector<12x256xf32> to vector<4x256xf32>
      %c0_23 = arith.constant 0 : index
      %c0_24 = arith.constant 0 : index
      %40 = vector.load %arg6[%c0_23, %c0_24] : memref<4x256xf32, #tpu.memory_space<vmem>>, vector<4x256xf32>
      tpu.vector_store %arg6[%c0_23, %c0_24], %39 {strides = array<i32>} : memref<4x256xf32, #tpu.memory_space<vmem>>, vector<4x256xf32>,
      %41 = vector.extract_strided_slice %38 {offsets = [4, 0], sizes = [4, 256], strides = [1, 1]} : vector<12x256xf32> to vector<4x256xf32>
      %42 = arith.truncf %41 : vector<4x256xf32> to vector<4x256xbf16>
      %c0_25 = arith.constant 0 : index
      %c0_26 = arith.constant 0 : index
      %43 = vector.load %arg7[%c0_25, %c0_26] : memref<4x256xbf16, #tpu.memory_space<vmem>>, vector<4x256xbf16>
      tpu.vector_store %arg7[%c0_25, %c0_26], %42 {strides = array<i32>} : memref<4x256xbf16, #tpu.memory_space<vmem>>, vector<4x256xbf16>,
      %44 = vector.extract_strided_slice %38 {offsets = [8, 0], sizes = [4, 256], strides = [1, 1]} : vector<12x256xf32> to vector<4x256xf32>
      %45 = arith.truncf %44 : vector<4x256xf32> to vector<4x256xbf16>
      %c0_27 = arith.constant 0 : index
      %c0_28 = arith.constant 0 : index
      %46 = vector.load %arg8[%c0_27, %c0_28] : memref<4x256xbf16, #tpu.memory_space<vmem>>, vector<4x256xbf16>
      tpu.vector_store %arg8[%c0_27, %c0_28], %45 {strides = array<i32>} : memref<4x256xbf16, #tpu.memory_space<vmem>>, vector<4x256xbf16>,
    } else {
    }
    %c128_i32 = arith.constant 128 : i32
    %3 = arith.muli %arg1, %c128_i32 : i32
    %4 = tpu.assume_multiple %3, 128 : i32
    %c0 = arith.constant 0 : index
    %5 = arith.index_cast %4 : i32 to index
    %6 = vector.load %arg6[%c0, %5] : memref<4x256xf32, #tpu.memory_space<vmem>>, vector<4x128xf32>
    %7 = tpu.transpose %6, [1, 0] : vector<4x128xf32> -> vector<128x4xf32>
    %8 = arith.truncf %7 : vector<128x4xf32> to vector<128x4xbf16>
    %c0_1 = arith.constant 0 : index
    %c0_2 = arith.constant 0 : index
    %9 = vector.load %arg7[%c0_1, %c0_2] : memref<4x256xbf16, #tpu.memory_space<vmem>>, vector<4x256xbf16>
    %cst = arith.constant dense<0.000000e+00> : vector<128x256xf32>
    %10 = tpu.matmul %8, %9, %cst {dimension_numbers = #tpu.dot_dimension_numbers<[1], [0], [0], [1], [0, 0, 1, 1], [], []>} : vector<128x4xbf16>, vector<4x256xbf16>, vector<128x256xf32> -> vector<128x256xf32>
    %cst_3 = arith.constant dense<0xFF800000> : vector<128xf32>
    %11 = vector.multi_reduction <maximumf>, %10, %cst_3 [1] : vector<128x256xf32> to vector<128xf32>
    %12 = vector.shape_cast %11 : vector<128xf32> to vector<128x1xf32>
    %13 = vector.broadcast %12 : vector<128x1xf32> to vector<128x256xf32>
    %14 = arith.subf %10, %13 : vector<128x256xf32>
    %15 = math.exp %14 : vector<128x256xf32>
    %16 = arith.truncf %15 : vector<128x256xf32> to vector<128x256xbf16>
    %c0_4 = arith.constant 0 : index
    %c0_5 = arith.constant 0 : index
    %17 = vector.load %arg8[%c0_4, %c0_5] : memref<4x256xbf16, #tpu.memory_space<vmem>>, vector<4x256xbf16>
    %cst_6 = arith.constant dense<0.000000e+00> : vector<4x128xf32>
    %18 = tpu.matmul %17, %16, %cst_6 {dimension_numbers = #tpu.dot_dimension_numbers<[1], [1], [0], [0], [0, 0, 1, 0], [], []>} : vector<4x256xbf16>, vector<128x256xbf16>, vector<4x128xf32> -> vector<4x128xf32>
    %cst_7 = arith.constant 1.000000e+00 : bf16
    %19 = vector.broadcast %cst_7 : bf16 to vector<1x256xbf16>
    %cst_8 = arith.constant dense<0.000000e+00> : vector<1x128xf32>
    %20 = tpu.matmul %19, %16, %cst_8 {dimension_numbers = #tpu.dot_dimension_numbers<[1], [1], [0], [0], [0, 0, 1, 0], [], []>} : vector<1x256xbf16>, vector<128x256xbf16>, vector<1x128xf32> -> vector<1x128xf32>
    %c0_9 = arith.constant 0 : index
    %c0_10 = arith.constant 0 : index
    %21 = vector.load %arg4[%c0_9, %c0_10] : memref<4x4xbf16, #tpu.memory_space<vmem>>, vector<4x4xbf16>
    %22 = arith.truncf %18 : vector<4x128xf32> to vector<4x128xbf16>
    %cst_11 = arith.constant dense<0.000000e+00> : vector<4x128xf32>
    %23 = tpu.matmul %21, %22, %cst_11 {dimension_numbers = #tpu.dot_dimension_numbers<[1], [0], [0], [1], [0, 0, 1, 1], [], []>} : vector<4x4xbf16>, vector<4x128xbf16>, vector<4x128xf32> -> vector<4x128xf32>
    %24 = tpu.reciprocal %20 {approx = true} : vector<1x128xf32> -> vector<1x128xf32>
    %25 = vector.broadcast %24 : vector<1x128xf32> to vector<4x128xf32>
    %26 = arith.mulf %23, %25 : vector<4x128xf32>
    %c0_12 = arith.constant 0 : index
    %c0_13 = arith.constant 0 : index
    %27 = arith.index_cast %4 : i32 to index
    %28 = vector.load %arg2[%c0_12, %c0_13, %27] : memref<1x4x256xf32, #tpu.memory_space<vmem>>, vector<1x4x128xf32>
    %29 = vector.shape_cast %28 : vector<1x4x128xf32> to vector<4x128xf32>
    %30 = arith.addf %29, %26 : vector<4x128xf32>
    %c0_14 = arith.constant 0 : index
    %c0_15 = arith.constant 0 : index
    %c0_16 = arith.constant 0 : index
    %31 = vector.load %arg5[%c0_14, %c0_15, %c0_16] : memref<1x4x128xf32, #tpu.memory_space<vmem>>, vector<1x4x128xf32>
    %32 = vector.shape_cast %31 : vector<1x4x128xf32> to vector<4x128xf32>
    %33 = vector.shape_cast %30 : vector<4x128xf32> to vector<1x4x128xf32>
    tpu.vector_store %arg5[%c0_14, %c0_15, %c0_16], %33 {strides = array<i32>} : memref<1x4x128xf32, #tpu.memory_space<vmem>>, vector<1x4x128xf32>,
    return
  }
  func.func @transform_0(%arg0: i32, %arg1: i32) -> (i32, i32, i32) {
    %c0_i32 = arith.constant 0 : i32
    %c0_i32_0 = arith.constant 0 : i32
    %c0_i32_1 = arith.constant 0 : i32
    return %arg0, %c0_i32, %c0_i32_0 : i32, i32, i32
  }
  func.func @transform_1(%arg0: i32, %arg1: i32) -> (i32, i32) {
    %c0_i32 = arith.constant 0 : i32
    %c0_i32_0 = arith.constant 0 : i32
    %c0_i32_1 = arith.constant 0 : i32
    return %c0_i32, %c0_i32_0 : i32, i32
  }
  func.func @transform_2(%arg0: i32, %arg1: i32) -> (i32, i32) {
    %c0_i32 = arith.constant 0 : i32
    %c0_i32_0 = arith.constant 0 : i32
    %c0_i32_1 = arith.constant 0 : i32
    return %c0_i32, %c0_i32_0 : i32, i32
  }
  func.func @transform_3(%arg0: i32, %arg1: i32) -> (i32, i32, i32) {
    %c0_i32 = arith.constant 0 : i32
    %c0_i32_0 = arith.constant 0 : i32
    return %arg0, %c0_i32, %arg1 : i32, i32, i32
  }
}

</mosaic_0001>

<bundles_post_ra>
// kernel: tpu_custom_call.1
= control target key start
LH: loop header
LB: loop body
LE: loop exit
PB: predicated region body
PF: predicated region fallthrough
CT: control target
= control target key end

     0   :  { %s1671_s0 = inlined_call_operand.hbm [shape: f32[2,4,256], index: 0, kind: input, shape index: {}]   ;;  %s1672_s1 = inlined_call_operand.vmem [shape: bf16[12,4], index: 1, kind: input, shape index: {}]   ;;  %s1673_s2 = inlined_call_operand.vmem [shape: bf16[4,4], index: 2, kind: input, shape index: {}]   ;;  %s1674_s3 = inlined_call_operand.hbm [shape: f32[2,4,256], index: 3, kind: output, shape index: {}]  }
   0x1   :  { %1678 = sst [smem:[#allocation13_spill]] %s1671_s0 }
   0x2   :  { %8 = vsyncpa [#allocation6], 0 }
   0x3   :  { %10 = vsyncpa [#allocation6 + $0x1], 0 }
   0x4   :  { %11 = vsyncpa [#allocation7], 0 }
   0x5   :  { %13 = vsyncpa [#allocation7 + $0x1], 0  ;;  %s1323_s12 = smov 0   ;;  %s1325_s13 = smov 0  }
   0x6   :  { %s1327_s14 = smov 0   ;;  %s1329_s15 = smov 0  }
   0x7   :  { %s1331_s16 = smov 0   ;;  %s1333_s17 = smov 0  }
   0x8   :  { %s1335_s18 = smov 0   ;;  %s1337_s19 = smov 0  }
   0x9   :  { %s1339_s20 = smov 0   ;;  %s1341_s21 = smov 0  }
   0xa   :  { %s1343_s22 = smov 0  }
   0xb LB: > { %s923_s23 = sadd.s32 4294967295, %s1293_s22   ;;  %s924_s24 = sadd.s32 4294967294, %s1293_s22   ;;  %s1293_s22 = sphi %s1343_s22, %s19_s22   ;;  %s1289_s21 = sphi %s1341_s21, %s1700_s21   ;;  %s1285_s20 = sphi %s1339_s20, %s1699_s20   ;;  %s1281_s19 = sphi %s1337_s19, %s1698_s19   ;;  %s1277_s18 = sphi %s1335_s18, %s1697_s18   ;;  %s1273_s17 = sphi %s1333_s17, %s1696_s17   ;;  %s1269_s16 = sphi %s1331_s16, %s1695_s16   ;;  %s1265_s15 = sphi %s1329_s15, %s1694_s15   ;;  %s1261_s14 = sphi %s1327_s14, %s1693_s14   ;;  %s1257_s13 = sphi %s1325_s13, %s1692_s13   ;;  %s1253_s12 = sphi %s1323_s12, %s1691_s12  }
   0xc   : > { %s28_s25 = sadd.s32 1, %s1285_s20  ;;  %s31_s26 = sadd.s32 1, %s1289_s21 }
   0xd   : > { %p29_p0 = scmp.ge.s32.totalorder %s28_s25, 2  ;;  %s38_s27 = sadd.s32 1, %s1273_s17 }
   0xe   : > { %p45_p1 = scmp.ne.s32.totalorder %s1273_s17, %s1269_s16  ;;  %p46_p2 = scmp.eq.s32.totalorder %s1293_s22, 0 }
   0xf   : > { %s1702_s25 = smov (%p29_p0, %s28_s25), 0  ;;  %s1704_s26 = smov (!%p29_p0, %s31_s26), %s1289_s21 }
  0x10   : > { %1679 = sst [smem:[#allocation11_spill]] %s1702_s25  ;;  %p1387_p3 = por %p46_p2, %p45_p1 }
  0x11   : > { %p51_p4 = scmp.ne.s32.totalorder %s1269_s16, %s1265_s15  ;;  %p33_p5 = scmp.ge.s32.totalorder %s1704_s26, 2 }
  0x12   : > { %p52_p6 = scmp.eq.s32.totalorder %s923_s23, 0  ;;  %s104_s29 = ssub.s32 %s1285_s20, %s1702_s25 }
  0x13   : > { %s108_s30 = sadd.s32 1, %s1261_s14  ;;  %s1706_s26 = smov (%p33_p5, %s1704_s26), 0 }
  0x14   : > { %1681 = sst [smem:[#allocation12_spill]] %s1706_s26  ;;  %p1397_p7 = por %p52_p6, %p51_p4 }
  0x15   : > { %p118_p8 = scmp.ne.s32.totalorder %s1261_s14, %s1257_s13  ;;  %s35_s5 = ssub.s32 %s1289_s21, %s1706_s26 }
  0x16   : > { %p119_p9 = scmp.eq.s32.totalorder %s923_s23, 3  ;;  %p36_p10 = scmp.eq.s32.totalorder %s35_s5, 0 }
  0x17   : > { %s105_s6 = sor.u32 %s104_s29, %s35_s5  ;;  %p124_p13 = scmp.ne.s32.totalorder %s1257_s13, %s1253_s12 }
  0x18   : > { %p106_p11 = scmp.eq.s32.totalorder %s105_s6, 0  ;;  %p1405_p12 = por %p119_p9, %p118_p8 }
  0x19   : > { %s1410_s8 = scalar_select %p36_p10, %s1273_s17, %s38_s27  }
  0x1a   : > { %s1413_s9 = scalar_select %p106_p11, %s1261_s14, %s108_s30  }
  0x1b   : > { %p125_p0 = scmp.eq.s32.totalorder %s924_s24, 3  ;;  %p981_p1 = scmp.lt.s32.totalorder %s1293_s22, 4 }
  0x1c   : > { %s151_s11 = sand.u32 1, %s1273_s17   ;;  %s960_s23 = sshll.u32 %s1289_s21, 7 }
  0x1d   : > { %p1418_p2 = por %p125_p0, %p124_p13  ;;  %s927_s15 = sshll.u32 %s151_s11, 3 }
  0x1e   : > { %s1685_s0 = sld [smem:[#allocation13_spill]]  ;;  %s155_s26 = scalar_lea.vmem [#allocation5], %s927_s15 }
  0x1f   : > { %s1684_s10 = scalar_select %p1418_p2, 1, 0 }
  0x20   : > { %s163_s25 = sshll.u32 %s155_s26, 4  ;;  %p1429_p4 = pnand %p981_p1, %p1387_p3  ;;  %s164_s25 = int_to_ptr.vmem [resolvable:$true] %s163_s25 }
  0x21   : > { %p930_p5 = scmp.ge.s32.totalorder %s1293_s22, 1  ;;  %p168_p6 = scmp.lt.s32.totalorder %s1293_s22, 5 }
  0x22   : > { %s152_s24 = scalar_lea.sflag [#allocation6], %s151_s11  ;;  %p1147_p8 = pneg %p1429_p4 }
  0x23   : > { %s1158_s30 = scalar_lea.vmem %s164_s25, 128  ;;  %s1295_s29 = smov [#allocation5]  }
  0x24   : > { %s161_s6 = scalar_lea.hbm %s1685_s0, %s960_s23  ;;  %p1159_p9 = scmp.ne.s32.totalorder %s164_s25, %s1158_s30 }
  0x25   : > { %s1163_s23 = sshll.u32 %s1295_s29, 4  ;;  %s1164_s23 = int_to_ptr.vmem [resolvable:$false] %s1163_s23 }
  0x26   : > { %p1161_p10 = pnand %p1159_p9, %p1147_p8  ;;  %s1165_s26 = scalar_lea.vmem %s1164_s23, 256 }
  0x27   : > { %p1166_p13 = scmp.lt.s32.totalorder %s164_s25, %s1164_s23  ;;  %p1167_p0 = scmp.lt.s32.totalorder %s1165_s26, %s1158_s30 }
  0x28   : > { %p1162_p11 = pneg %p1161_p10 }
  0x29   : > { %p1168_p3 = por %p1167_p0, %p1166_p13 }
  0x2b   : > { %p1169_p1 = pnand %p1168_p3, %p1162_p11 }
  0x2d   : > { %1172 = shalt.err (!%p1169_p1)
}
  0x2e   : > { %976 = dma.hbm_to_vmem [thread:$0]  (!%p1429_p4), %s161_s6, 128, %s164_s25, %s152_s24  }
  0x2f   : > { %p169_p2 = pnand %p930_p5, %p168_p6 }
  0x30   : > { %s174_s28 = sand.u32 (!%p169_p2), 1, %s1269_s16  }
  0x31   : > { %172 = sbr.rel (%p169_p2) target bundleno = 1299 (0x513), region = 32  ;;  %s1444_s11 = sshll.u32 (!%p169_p2), %s174_s28, 3 }
  0x32   : > { %s175_s15 = scalar_lea.sflag (!%p169_p2), [#allocation6], %s174_s28  ;;  %s178_s5 = scalar_lea.vmem (!%p169_p2), [#allocation5], %s1444_s11 }
  0x36   : > { %1244 = dma.done.wait (%p1397_p7), %s175_s15, 128  }
  0x37   : > { %1246 = vsyncadd (%p1397_p7), %s175_s15, 4294967168  ;;  %s1677_s25 = sand.u32 1, %s1257_s13   ;;  %p933_p2 = scmp.ne.s32.totalorder %s1277_s18, 0 }
  0x38   : > { %s1454_s6 = sshll.u32 %s1677_s25, 2 }
  0x39   : > { %s200_s27 = scalar_lea.vmem [#allocation8], %s1454_s6  ;;  %206 = sbr.rel (%p933_p2) target bundleno = 273 (0x111), region = 40 }
  0x3e   : > { %v207_v0 = vld [vmem:[%s178_s5] sm:$0xff]  ;;  %vm224_vm0 = vcmask 1041408   ;;  %v1296_v3 = vmov 0   ;;  %v1078_v6 = vld [vmem:[%s1672_s1] sm:$0x3f]   ;;  %vm220_vm1 = vcmask 31744   ;;  %v287_v9 = vlaneseq }
  0x3f   : > { %v209_v1 = vcombine.high %v207_v0, %v207_v0  ;;  %v211_v2 = vpack.c.bf16 %v207_v0, %v207_v0  ;;  %263 = vmatprep.mubr.bf16.mxu0 %v1296_v3  ;;  %v1297_v7 = vmov 1983009808  }
  0x40   : > { %v285_v8 = vunpack.c.l.s4 %v1297_v7  ;;  %v288_v11 = vshrl.u32 %v287_v9, 7 }
  0x41   : > { %v212_v4 = vpack.c.bf16 %v209_v1, %v209_v1  ;;  %v226_v5 = vsel %vm224_vm0, %v211_v2, 0 }
  0x42   : > { %v286_v10 = vunpack.c.0.s8 %v285_v8 }
  0x43   : > { %935 = vmatprep.subr.msk.bf16.mxu0 %vm224_vm0, %v212_v4 }
  0x44   : > { %246 = vmatpush1.bf16.msra.mxu0 %v226_v5  ;;  %v289_v13 = vsub.s32 %v286_v10, %v288_v11 }
  0x47   : > { %936 = vmatmul.mubr.msk.bf16.vlgmr.msra.gmra.mxu0 %vm220_vm1, %v1078_v6 }
 0x107   : > { %v265_v12 = vpop.f32.mrf.mxu0 }
 0x109   : > { %v267_v14 = vpop.f32.mrf.mxu0 }
 0x10a   : > { %v276_v15 = vcombine.low %v265_v12, %v267_v14  ;;  %v937_v16 = vpack.c.bf16 %v267_v14, %v265_v12 }
 0x10b   : > { %v269_v17 = vpop.f32.mrf.mxu0 }
 0x10c   : > { %278 = vst [vmem:[#allocation2] sm:$0xff] %v276_v15  ;;  %v290_v18 = vrot.slane %v937_v16, %v289_v13 }
 0x10d   : > { %v271_v19 = vpop.f32.mrf.mxu0 }
 0x10e   : > { %v291_v20 = vcombine.high %v290_v18, %v290_v18  ;;  %v938_v21 = vpack.c.bf16 %v271_v19, %v269_v17 }
 0x110   : > { %293 = vst [vmem:[#allocation3] sm:$0xf] %v291_v20  ;;  %939 = vst.sshfl [vmem:[#allocation4] sm:$0x33 pattern:$0x76325410] %v938_v21 }
 0x111 PF: > { %s940_s30 = sshll.u32 %s1277_s18, 7  ;;  %vm389_vm2 = vcmask 1041408   ;;  %v1298_v26 = vmov 0   ;;  %vm364_vm3 = vcmask 31744   ;;  %vm1301_vm4 = vmmov 0   ;;  %s956_s4 = sshll.u32 %s1281_s19, 1 }
 0x112   : > { %s1464_s29 = sshra.s32 %s940_s30, 7  ;;  %428 = vmatprep.mubr.bf16.mxu0 %v1298_v26  ;;  %s832_s30 = sadd.s32 %s1277_s18, %s956_s4 }
 0x113   : > { %s941_s23 = sshll.u32 %s1464_s29, 2  ;;  %s836_s28 = sshll.u32 %s200_s27, 4  ;;  %s1608_s28 = int_to_ptr.vmem [resolvable:$true] %s836_s28 }
 0x114   : > { %s312_s26 = scalar_lea.vmem [#allocation2], %s941_s23  ;;  %s816_s24 = scalar_lea.vmem %s178_s5, %s941_s23 [#allocation5] }
 0x115   : > { %v313_v25 = vld [vmem:[%s312_s26] sm:$0xf]  ;;  %s957_s26 = sshll.u32 %s832_s30, 6  ;;  %s1687_s18 = sand.u32 1, %s1257_s13  }
 0x116   : > { %314 = vxpose.xlu0.b32.start.end [1/1] (short) %v313_v25, 128  ;;  %s1606_s0 = scalar_lea.hbm %s1674_s3, %s957_s26  ;;  %s821_s19 = scalar_lea.sflag [#allocation7], %s1687_s18 }
 0x117   : > { %v942_v22 = vld.sshfl [vmem:[#allocation3] sm:$0x33 pattern:$0x76325410]  ;;  %s1173_s11 = scalar_lea.vmem %s1608_s28, 64  ;;  %s1302_s5 = smov [#allocation8]  }
 0x118   : > { %v363_v23 = vcombine.high %v942_v22, %v942_v22  ;;  %v391_v24 = vsel %vm389_vm2, %v942_v22, 0  ;;  %p1174_p7 = scmp.ne.s32.totalorder %s1608_s28, %s1173_s11  ;;  %s1177_s25 = sshll.u32 %s1302_s5, 4  ;;  %s1178_s25 = int_to_ptr.vmem [resolvable:$false] %s1177_s25 }
 0x119   : > { %s1179_s29 = scalar_lea.vmem %s1178_s25, 128  ;;  %p1180_p6 = scmp.lt.s32.totalorder %s1608_s28, %s1178_s25 }
 0x11a   : > { %943 = vmatprep.subr.msk.bf16.mxu0 %vm389_vm2, %v363_v23  ;;  %p1175_p4 = pnand %p1174_p7, %p1405_p12  ;;  %p1181_p8 = scmp.lt.s32.totalorder %s1179_s29, %s1173_s11 }
 0x11b   : > { %411 = vmatpush1.bf16.msra.mxu0 %v391_v24 }
 0x11c   : > { %p1176_p5 = pneg %p1175_p4  ;;  %p1182_p9 = por %p1181_p8, %p1180_p6 }
 0x11e   : > { %p1183_p10 = pnand %p1182_p9, %p1176_p5 }
 0x192   : > { %v330_v27 = vpop.trf.xlu0 }
 0x196   : > { %v331_v28 = vpop.trf.xlu0 }
 0x197   : > { %v346_v29 = vpack.c.bf16 %v331_v28, %v330_v27 }
 0x199   : > { %944 = vmatmul.mubr.msk.bf16.vlgmr.msra.gmra.mxu0 %vm364_vm3, %v346_v29 }
 0x19a   : > { %v332_v30 = vpop.trf.xlu0  ;;  %438 = vmatprep.mubr.bf16.mxu0 %v1298_v26 }
 0x19e   : > { %v333_v31 = vpop.trf.xlu0 }
 0x19f   : > { %v347_v32 = vpack.c.bf16 %v333_v31, %v332_v30 }
 0x1a1   : > { %945 = vmatmul.mubr.msk.bf16.gmra.mxu0 %vm364_vm3, %v347_v32 }
 0x1a2   : > { %v334_v33 = vpop.trf.xlu0  ;;  %448 = vmatprep.mubr.bf16.mxu0 %v1298_v26 }
 0x1a6   : > { %v335_v34 = vpop.trf.xlu0 }
 0x1a7   : > { %v348_v35 = vpack.c.bf16 %v335_v34, %v334_v33 }
 0x1a9   : > { %946 = vmatmul.mubr.msk.bf16.gmra.mxu0 %vm364_vm3, %v348_v35  ;;  %v1557_v35 = vld.sshfl [vmem:[#allocation4] sm:$0x33 pattern:$0x76325410] }
 0x1aa   : > { %v336_v36 = vpop.trf.xlu0  ;;  %458 = vmatprep.mubr.bf16.mxu0 %v1298_v26 }
 0x1ae   : > { %v337_v37 = vpop.trf.xlu0 }
 0x1af   : > { %v349_v38 = vpack.c.bf16 %v337_v37, %v336_v36  ;;  %v678_v36 = vcombine.high %v1557_v35, %v1557_v35  ;;  %v1299_v37 = vmov 1065369472  }
 0x1b1   : > { %947 = vmatmul.mubr.msk.bf16.gmra.mxu0 %vm364_vm3, %v349_v38  ;;  %713 = vmatprep.mubr.bf16.mxu1 %v678_v36 }
 0x1b2   : > { %v338_v39 = vpop.trf.xlu0  ;;  %468 = vmatprep.mubr.bf16.mxu0 %v1298_v26 }
 0x1b6   : > { %v339_v40 = vpop.trf.xlu0 }
 0x1b7   : > { %v350_v41 = vpack.c.bf16 %v339_v40, %v338_v39 }
 0x1b9   : > { %948 = vmatmul.mubr.msk.bf16.gmra.mxu0 %vm364_vm3, %v350_v41 }
 0x1ba   : > { %v340_v42 = vpop.trf.xlu0  ;;  %478 = vmatprep.mubr.bf16.mxu0 %v1298_v26 }
 0x1be   : > { %v341_v43 = vpop.trf.xlu0 }
 0x1bf   : > { %v351_v44 = vpack.c.bf16 %v341_v43, %v340_v42 }
 0x1c1   : > { %949 = vmatmul.mubr.msk.bf16.gmra.mxu0 %vm364_vm3, %v351_v44 }
 0x1c2   : > { %v342_v45 = vpop.trf.xlu0  ;;  %488 = vmatprep.mubr.bf16.mxu0 %v1298_v26 }
 0x1c6   : > { %v343_v46 = vpop.trf.xlu0 }
 0x1c7   : > { %v352_v47 = vpack.c.bf16 %v343_v46, %v342_v45 }
 0x1c9   : > { %950 = vmatmul.mubr.msk.bf16.gmra.mxu0 %vm364_vm3, %v352_v47 }
 0x1ca   : > { %v344_v48 = vpop.trf.xlu0  ;;  %498 = vmatprep.mubr.bf16.mxu0 %v1298_v26 }
 0x1ce   : > { %v345_v49 = vpop.trf.xlu0 }
 0x1cf   : > { %v353_v50 = vpack.c.bf16 %v345_v49, %v344_v48 }
 0x1d1   : > { %951 = vmatmul.mubr.msk.bf16.gmra.mxu0 %vm364_vm3, %v353_v50 }
 0x1d2   : > { %753 = vmatprep.mubr.bf16.mxu0 %v1299_v37 }
 0x259   : > { %v1479_v51 = vpop.f32.mrf.mxu0 }
 0x25b   : > { %v1481_v52 = vpop.f32.mrf.mxu0 }
 0x25c   : > { %v509_v33 = vmax.f32 %v1479_v51, %v1481_v52 }
 0x25d   : > { %v1483_v53 = vpop.f32.mrf.mxu0 }
 0x25f   : > { %v1485_v54 = vpop.f32.mrf.mxu0 }
 0x260   : > { %v512_v34 = vmax.f32 %v1483_v53, %v1485_v54 }
 0x261   : > { %v1487_v55 = vpop.f32.mrf.mxu0 }
 0x263   : > { %v1489_v56 = vpop.f32.mrf.mxu0 }
 0x264   : > { %v515_v31 = vmax.f32 %v1487_v55, %v1489_v56 }
 0x265   : > { %v1491_v57 = vpop.f32.mrf.mxu0 }
 0x267   : > { %v1493_v58 = vpop.f32.mrf.mxu0 }
 0x268   : > { %v518_v32 = vmax.f32 %v1491_v57, %v1493_v58 }
 0x269   : > { %v1495_v59 = vpop.f32.mrf.mxu0 }
 0x26b   : > { %v1497_v60 = vpop.f32.mrf.mxu0 }
 0x26c   : > { %v521_v29 = vmax.f32 %v1495_v59, %v1497_v60 }
 0x26d   : > { %v1499_v61 = vpop.f32.mrf.mxu0 }
 0x26f   : > { %v1501_v62 = vpop.f32.mrf.mxu0 }
 0x270   : > { %v524_v30 = vmax.f32 %v1499_v61, %v1501_v62 }
 0x271   : > { %v1503_v63 = vpop.f32.mrf.mxu0 }
 0x273   : > { %v1505_v0 = vpop.f32.mrf.mxu0 }
 0x274   : > { %v527_v27 = vmax.f32 %v1503_v63, %v1505_v0 }
 0x275   : > { %v1507_v1 = vpop.f32.mrf.mxu0 }
 0x277   : > { %v1509_v2 = vpop.f32.mrf.mxu0 }
 0x278   : > { %v530_v28 = vmax.f32 %v1507_v1, %v1509_v2 }
 0x279   : > { %v1511_v3 = vpop.f32.mrf.mxu0 }
 0x27b   : > { %v1513_v4 = vpop.f32.mrf.mxu0 }
 0x27c   : > { %v533_v25 = vmax.f32 %v1511_v3, %v1513_v4 }
 0x27d   : > { %v1515_v5 = vpop.f32.mrf.mxu0 }
 0x27f   : > { %v1517_v6 = vpop.f32.mrf.mxu0 }
 0x280   : > { %v536_v26 = vmax.f32 %v1515_v5, %v1517_v6 }
 0x281   : > { %v1519_v7 = vpop.f32.mrf.mxu0 }
 0x283   : > { %v1521_v8 = vpop.f32.mrf.mxu0 }
 0x284   : > { %v539_v23 = vmax.f32 %v1519_v7, %v1521_v8 }
 0x285   : > { %v1523_v9 = vpop.f32.mrf.mxu0 }
 0x287   : > { %v1525_v10 = vpop.f32.mrf.mxu0 }
 0x288   : > { %v542_v24 = vmax.f32 %v1523_v9, %v1525_v10 }
 0x289   : > { %v490_v11 = vpop.f32.mrf.mxu0 }
 0x28b   : > { %v492_v12 = vpop.f32.mrf.mxu0 }
 0x28c   : > { %v545_v21 = vmax.f32 %v490_v11, %v492_v12 }
 0x28d   : > { %v1527_v13 = vpop.f32.mrf.mxu0 }
 0x28f   : > { %v1529_v14 = vpop.f32.mrf.mxu0 }
 0x290   : > { %v548_v22 = vmax.f32 %v1527_v13, %v1529_v14 }
 0x291   : > { %v500_v15 = vpop.f32.mrf.mxu0 }
 0x293   : > { %v502_v16 = vpop.f32.mrf.mxu0 }
 0x294   : > { %v551_v17 = vmax.f32 %v500_v15, %v502_v16 }
 0x295   : > { %v504_v18 = vpop.f32.mrf.mxu0 }
 0x296   : > { %552 = vmax.xlane.f32.xlu0 %v551_v17 }
 0x297   : > { %v506_v19 = vpop.f32.mrf.mxu0 }
 0x298   : > { %v554_v20 = vmax.f32 %v504_v18, %v506_v19 }
 0x29a   : > { %555 = vmax.xlane.f32.xlu1 %v554_v20 }
 0x29e   : > { %546 = vmax.xlane.f32.xlu1 %v545_v21 }
 0x2a2   : > { %549 = vmax.xlane.f32.xlu1 %v548_v22 }
 0x2a6   : > { %540 = vmax.xlane.f32.xlu1 %v539_v23 }
 0x2aa   : > { %543 = vmax.xlane.f32.xlu1 %v542_v24 }
 0x2ae   : > { %534 = vmax.xlane.f32.xlu1 %v533_v25 }
 0x2b2   : > { %537 = vmax.xlane.f32.xlu1 %v536_v26 }
 0x2b6   : > { %528 = vmax.xlane.f32.xlu1 %v527_v27 }
 0x2ba   : > { %531 = vmax.xlane.f32.xlu1 %v530_v28 }
 0x2be   : > { %522 = vmax.xlane.f32.xlu1 %v521_v29 }
 0x2c2   : > { %525 = vmax.xlane.f32.xlu1 %v524_v30 }
 0x2c6   : > { %516 = vmax.xlane.f32.xlu1 %v515_v31 }
 0x2ca   : > { %519 = vmax.xlane.f32.xlu1 %v518_v32 }
 0x2ce   : > { %510 = vmax.xlane.f32.xlu1 %v509_v33 }
 0x2d2   : > { %513 = vmax.xlane.f32.xlu1 %v512_v34 }
 0x31f   : > { %v553_v38 = vpop.xlane.xlu0 %552 }
 0x320   : > { %v585_v39 = vsub.f32 %v500_v15, %v553_v38  ;;  %v586_v40 = vsub.f32 %v502_v16, %v553_v38 }
 0x322   : > { %v645_v41 = vmul.f32 1.442695, %v585_v39  ;;  %v647_v42 = vmul.f32 1.442695, %v586_v40 }
 0x323   : > { %v556_v43 = vpop.xlane.xlu1 %555 }
 0x324   : > { %v587_v44 = vsub.f32 %v504_v18, %v556_v43  ;;  %v588_v45 = vsub.f32 %v506_v19, %v556_v43  ;;  %1079 = vpow2.f32 %v645_v41 }
 0x325   : > { %1081 = vpow2.f32 %v647_v42 }
 0x326   : > { %v649_v46 = vmul.f32 1.442695, %v587_v44  ;;  %v651_v47 = vmul.f32 1.442695, %v588_v45 }
 0x327   : > { %v547_v48 = vpop.xlane.xlu1 %546 }
 0x328   : > { %1083 = vpow2.f32 %v649_v46  ;;  %v581_v49 = vsub.f32 %v490_v11, %v547_v48  ;;  %v582_v50 = vsub.f32 %v492_v12, %v547_v48 }
 0x329   : > { %1085 = vpow2.f32 %v651_v47 }
 0x32a   : > { %v637_v17 = vmul.f32 1.442695, %v581_v49  ;;  %v639_v20 = vmul.f32 1.442695, %v582_v50 }
 0x32b   : > { %v550_v21 = vpop.xlane.xlu1 %549 }
 0x32c   : > { %v583_v15 = vsub.f32 %v1527_v13, %v550_v21  ;;  %v584_v16 = vsub.f32 %v1529_v14, %v550_v21  ;;  %1087 = vpow2.f32 %v637_v17 }
 0x32d   : > { %1089 = vpow2.f32 %v639_v20 }
 0x32e   : > { %v641_v22 = vmul.f32 1.442695, %v583_v15  ;;  %v643_v18 = vmul.f32 1.442695, %v584_v16 }
 0x32f   : > { %v541_v19 = vpop.xlane.xlu1 %540 }
 0x330   : > { %1091 = vpow2.f32 %v641_v22  ;;  %v577_v23 = vsub.f32 %v1519_v7, %v541_v19  ;;  %v578_v24 = vsub.f32 %v1521_v8, %v541_v19 }
 0x331   : > { %1093 = vpow2.f32 %v643_v18  ;;  %v1080_v12 = vpop.eup %1079 }
 0x332   : > { %v629_v11 = vmul.f32 1.442695, %v577_v23  ;;  %v631_v25 = vmul.f32 1.442695, %v578_v24  ;;  %v1082_v27 = vpop.eup %1081 }
 0x333   : > { %v544_v26 = vpop.xlane.xlu1 %543 }
 0x334   : > { %v579_v13 = vsub.f32 %v1523_v9, %v544_v26  ;;  %v580_v14 = vsub.f32 %v1525_v10, %v544_v26  ;;  %1095 = vpow2.f32 %v629_v11 }
 0x335   : > { %v1084_v28 = vpop.eup %1083  ;;  %1097 = vpow2.f32 %v631_v25 }
 0x336   : > { %v1086_v29 = vpop.eup %1085  ;;  %v633_v30 = vmul.f32 1.442695, %v579_v13  ;;  %v635_v31 = vmul.f32 1.442695, %v580_v14  ;;  %v667_v32 = vpack.c.bf16 %v1084_v28, %v1080_v12 }
 0x337   : > { %v535_v7 = vpop.xlane.xlu1 %534  ;;  %v668_v33 = vpack.c.bf16 %v1086_v29, %v1082_v27 }
 0x338   : > { %1099 = vpow2.f32 %v633_v30  ;;  %v573_v8 = vsub.f32 %v1511_v3, %v535_v7  ;;  %v574_v34 = vsub.f32 %v1513_v4, %v535_v7 }
 0x339   : > { %1101 = vpow2.f32 %v635_v31  ;;  %681 = vmatprep.subr.bf16.mxu1 %v668_v33  ;;  %721 = vmatprep.subr.bf16.mxu0 %v668_v33  ;;  %v1088_v10 = vpop.eup %1087 }
 0x33a   : > { %v621_v9 = vmul.f32 1.442695, %v573_v8  ;;  %682 = vmatpush1.bf16.xpose.msra.mxu1 %v667_v32  ;;  %722 = vmatpush1.bf16.xpose.msra.mxu0 %v667_v32  ;;  %v623_v36 = vmul.f32 1.442695, %v574_v34  ;;  %v1090_v39 = vpop.eup %1089 }
 0x33b   : > { %v538_v38 = vpop.xlane.xlu1 %537 }
 0x33c   : > { %v575_v40 = vsub.f32 %v1515_v5, %v538_v38  ;;  %v576_v41 = vsub.f32 %v1517_v6, %v538_v38  ;;  %1103 = vpow2.f32 %v621_v9 }
 0x33d   : > { %v1092_v42 = vpop.eup %1091  ;;  %1105 = vpow2.f32 %v623_v36 }
 0x33e   : > { %v1094_v43 = vpop.eup %1093  ;;  %v625_v3 = vmul.f32 1.442695, %v575_v40  ;;  %v627_v44 = vmul.f32 1.442695, %v576_v41  ;;  %v665_v4 = vpack.c.bf16 %v1092_v42, %v1088_v10 }
 0x33f   : > { %v529_v45 = vpop.xlane.xlu1 %528  ;;  %v666_v46 = vpack.c.bf16 %v1094_v43, %v1090_v39 }
 0x340   : > { %1107 = vpow2.f32 %v625_v3  ;;  %v569_v47 = vsub.f32 %v1503_v63, %v529_v45  ;;  %v570_v48 = vsub.f32 %v1505_v0, %v529_v45 }
 0x341   : > { %1109 = vpow2.f32 %v627_v44  ;;  %683 = vmatprep.subr.bf16.mxu1 %v666_v46  ;;  %723 = vmatprep.subr.bf16.mxu0 %v666_v46  ;;  %v1096_v6 = vpop.eup %1095 }
 0x342   : > { %v613_v5 = vmul.f32 1.442695, %v569_v47  ;;  %684 = vmatpush1.bf16.xpose.msra.mxu1 %v665_v4  ;;  %724 = vmatpush1.bf16.xpose.msra.mxu0 %v665_v4  ;;  %v615_v49 = vmul.f32 1.442695, %v570_v48  ;;  %v1098_v17 = vpop.eup %1097 }
 0x343   : > { %v532_v50 = vpop.xlane.xlu1 %531 }
 0x344   : > { %v571_v20 = vsub.f32 %v1507_v1, %v532_v50  ;;  %v572_v21 = vsub.f32 %v1509_v2, %v532_v50  ;;  %1111 = vpow2.f32 %v613_v5 }
 0x345   : > { %v1100_v15 = vpop.eup %1099  ;;  %1113 = vpow2.f32 %v615_v49 }
 0x346   : > { %v1102_v16 = vpop.eup %1101  ;;  %v617_v63 = vmul.f32 1.442695, %v571_v20  ;;  %v619_v22 = vmul.f32 1.442695, %v572_v21  ;;  %v663_v0 = vpack.c.bf16 %v1100_v15, %v1096_v6 }
 0x347   : > { %v523_v18 = vpop.xlane.xlu1 %522  ;;  %v664_v19 = vpack.c.bf16 %v1102_v16, %v1098_v17 }
 0x348   : > { %1115 = vpow2.f32 %v617_v63  ;;  %v565_v23 = vsub.f32 %v1495_v59, %v523_v18  ;;  %v566_v24 = vsub.f32 %v1497_v60, %v523_v18 }
 0x349   : > { %1117 = vpow2.f32 %v619_v22  ;;  %685 = vmatprep.subr.bf16.mxu1 %v664_v19  ;;  %725 = vmatprep.subr.bf16.mxu0 %v664_v19  ;;  %v1104_v2 = vpop.eup %1103 }
 0x34a   : > { %v605_v1 = vmul.f32 1.442695, %v565_v23  ;;  %686 = vmatpush1.bf16.xpose.msra.mxu1 %v663_v0  ;;  %726 = vmatpush1.bf16.xpose.msra.mxu0 %v663_v0  ;;  %v607_v11 = vmul.f32 1.442695, %v566_v24  ;;  %v1106_v25 = vpop.eup %1105  ;;  %v1300_v0 = vmov 0.0  }
 0x34b   : > { %v526_v12 = vpop.xlane.xlu1 %525 }
 0x34c   : > { %v567_v26 = vsub.f32 %v1499_v61, %v526_v12  ;;  %v568_v27 = vsub.f32 %v1501_v62, %v526_v12  ;;  %1119 = vpow2.f32 %v605_v1 }
 0x34d   : > { %v1108_v13 = vpop.eup %1107  ;;  %1121 = vpow2.f32 %v607_v11 }
 0x34e   : > { %v1110_v14 = vpop.eup %1109  ;;  %v609_v59 = vmul.f32 1.442695, %v567_v26  ;;  %v611_v28 = vmul.f32 1.442695, %v568_v27  ;;  %v661_v60 = vpack.c.bf16 %v1108_v13, %v1104_v2  ;;  %v810_v26 = vlaneseq }
 0x34f   : > { %v517_v29 = vpop.xlane.xlu1 %516  ;;  %v662_v30 = vpack.c.bf16 %v1110_v14, %v1106_v25 }
 0x350   : > { %1123 = vpow2.f32 %v609_v59  ;;  %v561_v31 = vsub.f32 %v1487_v55, %v517_v29  ;;  %v562_v32 = vsub.f32 %v1489_v56, %v517_v29  ;;  %v811_v27 = vshrl.u32 %v810_v26, 7 }
 0x351   : > { %1125 = vpow2.f32 %v611_v28  ;;  %687 = vmatprep.subr.bf16.mxu1 %v662_v30  ;;  %727 = vmatprep.subr.bf16.mxu0 %v662_v30  ;;  %v1112_v62 = vpop.eup %1111  ;;  %v817_v28 = vld [vmem:[%s816_s24] sm:$0xf] }
 0x352   : > { %v597_v61 = vmul.f32 1.442695, %v561_v31  ;;  %688 = vmatpush1.bf16.xpose.msra.mxu1 %v661_v60  ;;  %728 = vmatpush1.bf16.xpose.msra.mxu0 %v661_v60  ;;  %v599_v7 = vmul.f32 1.442695, %v562_v32  ;;  %v1114_v8 = vpop.eup %1113  ;;  %v812_v13 = vsub.s32 0, %v811_v27 }
 0x353   : > { %v520_v33 = vpop.xlane.xlu1 %519 }
 0x354   : > { %v563_v34 = vsub.f32 %v1491_v57, %v520_v33  ;;  %v564_v9 = vsub.f32 %v1493_v58, %v520_v33  ;;  %1127 = vpow2.f32 %v597_v61 }
 0x355   : > { %v1116_v10 = vpop.eup %1115  ;;  %1129 = vpow2.f32 %v599_v7 }
 0x356   : > { %v1118_v36 = vpop.eup %1117  ;;  %v601_v55 = vmul.f32 1.442695, %v563_v34  ;;  %v603_v38 = vmul.f32 1.442695, %v564_v9  ;;  %v659_v56 = vpack.c.bf16 %v1116_v10, %v1112_v62 }
 0x357   : > { %v511_v39 = vpop.xlane.xlu1 %510  ;;  %v660_v40 = vpack.c.bf16 %v1118_v36, %v1114_v8 }
 0x358   : > { %1131 = vpow2.f32 %v601_v55  ;;  %v557_v41 = vsub.f32 %v1479_v51, %v511_v39  ;;  %v558_v42 = vsub.f32 %v1481_v52, %v511_v39 }
 0x359   : > { %1133 = vpow2.f32 %v603_v38  ;;  %689 = vmatprep.subr.bf16.mxu1 %v660_v40  ;;  %729 = vmatprep.subr.bf16.mxu0 %v660_v40  ;;  %v1120_v58 = vpop.eup %1119 }
 0x35a   : > { %v589_v57 = vmul.f32 1.442695, %v557_v41  ;;  %690 = vmatpush1.bf16.xpose.msra.mxu1 %v659_v56  ;;  %730 = vmatpush1.bf16.xpose.msra.mxu0 %v659_v56  ;;  %v591_v43 = vmul.f32 1.442695, %v558_v42  ;;  %v1122_v44 = vpop.eup %1121 }
 0x35b   : > { %v514_v3 = vpop.xlane.xlu1 %513 }
 0x35c   : > { %v559_v4 = vsub.f32 %v1483_v53, %v514_v3  ;;  %v560_v45 = vsub.f32 %v1485_v54, %v514_v3  ;;  %1135 = vpow2.f32 %v589_v57 }
 0x35d   : > { %v1124_v46 = vpop.eup %1123  ;;  %1137 = vpow2.f32 %v591_v43 }
 0x35e   : > { %v1126_v47 = vpop.eup %1125  ;;  %v593_v51 = vmul.f32 1.442695, %v559_v4  ;;  %v595_v48 = vmul.f32 1.442695, %v560_v45  ;;  %v657_v52 = vpack.c.bf16 %v1124_v46, %v1120_v58 }
 0x35f   : > { %v658_v5 = vpack.c.bf16 %v1126_v47, %v1122_v44 }
 0x360   : > { %1139 = vpow2.f32 %v593_v51 }
 0x361   : > { %1141 = vpow2.f32 %v595_v48  ;;  %691 = vmatprep.subr.bf16.mxu1 %v658_v5  ;;  %731 = vmatprep.subr.bf16.mxu0 %v658_v5  ;;  %v1128_v6 = vpop.eup %1127 }
 0x362   : > { %692 = vmatpush1.bf16.xpose.msra.mxu1 %v657_v52  ;;  %732 = vmatpush1.bf16.xpose.msra.mxu0 %v657_v52  ;;  %v1130_v49 = vpop.eup %1129 }
 0x365   : > { %v1132_v50 = vpop.eup %1131 }
 0x366   : > { %v1134_v53 = vpop.eup %1133  ;;  %v655_v17 = vpack.c.bf16 %v1132_v50, %v1128_v6 }
 0x367   : > { %v656_v54 = vpack.c.bf16 %v1134_v53, %v1130_v49 }
 0x369   : > { %693 = vmatprep.subr.bf16.mxu1 %v656_v54  ;;  %733 = vmatprep.subr.bf16.mxu0 %v656_v54  ;;  %v1136_v20 = vpop.eup %1135 }
 0x36a   : > { %694 = vmatpush1.bf16.xpose.msra.mxu1 %v655_v17  ;;  %734 = vmatpush1.bf16.xpose.msra.mxu0 %v655_v17  ;;  %v1138_v21 = vpop.eup %1137 }
 0x36d   : > { %v1140_v15 = vpop.eup %1139 }
 0x36e   : > { %v1142_v16 = vpop.eup %1141  ;;  %v653_v63 = vpack.c.bf16 %v1140_v15, %v1136_v20 }
 0x36f   : > { %v654_v22 = vpack.c.bf16 %v1142_v16, %v1138_v21 }
 0x371   : > { %695 = vmatprep.subr.bf16.mxu1 %v654_v22  ;;  %735 = vmatprep.subr.bf16.mxu0 %v654_v22 }
 0x372   : > { %696 = vmatpush1.bf16.xpose.msra.mxu1 %v653_v63  ;;  %736 = vmatpush1.bf16.xpose.msra.mxu0 %v653_v63 }
 0x373   : > { %963 = vmatprep.subr.bf16.mxu1 %v1300_v0 }
 0x379   : > { %714 = vmatmul.mubr.bf16.vlgmr.msra.gmra.mxu1 %v1557_v35  ;;  %754 = vmatmul.mubr.bf16.vlgmr.msra.gmra.mxu0 %v1299_v37  ;;  %v761_v35 = vld [vmem:[%s1673_s2] sm:$0x3] }
 0x37a   : > { %965 = vmatprep.mubr.msk.bf16.mxu1 %vm1301_vm4, %v1300_v0 }
 0x439   : > { %v715_v18 = vpop.f32.mrf.mxu1  ;;  %v755_v19 = vpop.f32.mrf.mxu0 }
 0x43a   : > { %v762_v23 = vpack.c.bf16 %v715_v18, %v715_v18  ;;  %1143 = vrcp.f32 %v755_v19 }
 0x43b   : > { %v717_v24 = vpop.f32.mrf.mxu1  ;;  %v757_v1 = vpop.f32.mrf.mxu0 }
 0x43c   : > { %v767_v2 = vsel %vm389_vm2, %v762_v23, 0 }
 0x43d   : > { %v718_v11 = vpop.f32.mrf.mxu1  ;;  %964 = vmatpush3.bf16.msra.mxu1 %v767_v2  ;;  %v758_v37 = vpop.f32.mrf.mxu0 }
 0x43f   : > { %v719_v12 = vpop.f32.mrf.mxu1  ;;  %v759_v25 = vpop.f32.mrf.mxu0 }
 0x440   : > { %966 = vmatmul.mubr.msk.bf16.vlgmr.msra.gmra.mxu1 %vm364_vm3, %v761_v35 }
 0x447   : > { %v1144_v14 = vpop.eup %1143 }
 0x448   : > { %v813_v59 = vrot.slane %v1144_v14, %v812_v13 }
 0x500   : > { %v803_v60 = vpop.f32.mrf.mxu1 }
 0x501   : > { %v814_v29 = vmul.f32 %v813_v59, %v803_v60 }
 0x502   : > { %v967_v30 = vpop.f32.mrf.mxu1 }
 0x503   : > { %v818_v31 = vadd.f32 %v817_v28, %v814_v29 }
 0x504   : > { %v806_v32 = vpop.f32.mrf.mxu1 }
 0x505   : > { %819 = vst [vmem:[%s200_s27] sm:$0xf] %v818_v31 }
 0x506   : > { %v968_v61 = vpop.f32.mrf.mxu1 }
 0x507   : > { %1186 = shalt.err (!%p1183_p10)
}
 0x508   : > { %s1187_s6 = scalar_lea.hbm %s1606_s0, 64  ;;  %s1191_s4 = scalar_lea.hbm %s1674_s3, 256 }
 0x509   : > { %p1188_p11 = scmp.ne.s32.totalorder %s1606_s0, %s1187_s6  ;;  %p1192_p3 = scmp.lt.s32.totalorder %s1606_s0, %s1674_s3 }
 0x50a   : > { %p1193_p1 = scmp.lt.s32.totalorder %s1191_s4, %s1187_s6 }
 0x50b   : > { %p1189_p13 = pnand %p1188_p11, %p1405_p12 }
 0x50c   : > { %p1194_p2 = por %p1193_p1, %p1192_p3 }
 0x50d   : > { %p1190_p0 = pneg %p1189_p13 }
 0x50f   : > { %p1195_p7 = pnand %p1194_p2, %p1190_p0 }
 0x511   : > { %1198 = shalt.err (!%p1195_p7)
}
 0x512   : > { %971 = dma.vmem_to_hbm [thread:$0]  (%p1405_p12), %s1608_s28, 64, %s1606_s0, %s821_s19  }
 0x513 PF: > { %p982_p4 = scmp.ge.s32.totalorder %s1293_s22, 2  ;;  %s848_s26 = sand.u32 1, %s1253_s12  }
 0x514   : > { %p1688_p5 = scmp.ne.s32.totalorder %s1684_s10, 0  ;;  %s849_s15 = scalar_lea.sflag [#allocation7], %s848_s26 }
 0x516   : > { %p978_p6 = pnand %p982_p4, %p1688_p5 }
 0x518   : > { %p979_p8 = pneg %p978_p6 }
 0x51a   : > { %1248 = dma.done.wait (%p979_p8), %s849_s15, 64  }
 0x51b   : > { %1250 = vsyncadd (%p979_p8), %s849_s15, 4294967232  ;;  %s19_s22 = sadd.s32 1, %s1293_s22   ;;  %s1689_s0 = sld [smem:[#allocation11_spill]] }
 0x51c   : > { %p16_p9 = scmp.ge.s32.totalorder %s19_s22, 6   ;;  %s1690_s7 = sld [smem:[#allocation12_spill]] }
 0x51d   : > { %s1691_s12 = smov %s1257_s13  ;;  %s1692_s13 = smov %s1261_s14 }
 0x51e   : > { %s1693_s14 = smov %s1413_s9  ;;  %s1694_s15 = smov %s1269_s16 }
 0x51f   : > { %s1695_s16 = smov %s1273_s17  ;;  %s1696_s17 = smov %s1410_s8 }
 0x520   : > { %s1697_s18 = smov %s1285_s20  ;;  %s1698_s19 = smov %s1289_s21 }
 0x521   : > { %s1699_s20 = smov %s1689_s0  ;;  %18 = sbr.rel (!%p16_p9) target bundleno = 11 (0xb), region = 83 }
 0x522   : > { %s1700_s21 = smov %s1690_s7 }
 0x526   :  { %854 = vsyncpa [#allocation6], 1 }
 0x527   :  { %856 = vsyncpa [#allocation6 + $0x1], 1 }
 0x528   :  { %857 = vsyncpa [#allocation7], 1 }
 0x529   :  { %859 = vsyncpa [#allocation7 + $0x1], 1 }

</bundles_post_ra>
